<compile_context>
chip_gen: v6e
topology: v6e:2x2x1
jax: 0.10.0
libtpu: 0.0.40
codegen_flags: <defaults>
</compile_context>

<pallas_src>
import jax
import jax.numpy as jnp
from jax.experimental import pallas as pl
from jax.experimental.pallas import tpu as pltpu


# ----------------------------------------------------------------------------
# Pallas kernel: fused channel-MLP autoencoder + residual add,
# operating on (C, TILE_HW) tiles (channels on sublanes, pixels on lanes).
# ----------------------------------------------------------------------------
def _make_dae_kernel(num_layers: int):
    def kernel(*refs):
        x_ref = refs[0]
        w_refs = refs[1 : 1 + num_layers]                 # (c_out, c_in) each
        b_refs = refs[1 + num_layers : 1 + 2 * num_layers]  # (c_out, 1) each
        out_ref = refs[1 + 2 * num_layers]

        x0 = x_ref[...].astype(jnp.float32)               # (C, TILE_HW)
        h = x0
        for i in range(num_layers):
            # per-pixel 1x1 conv == (c_out, c_in) @ (c_in, TILE_HW)
            h = jnp.dot(w_refs[i][...], h,
                        preferred_element_type=jnp.float32)
            h = h + b_refs[i][...]                         # broadcast over lanes
            if i < num_layers - 1:
                h = jnp.maximum(h, 0.0)                    # ReLU (not last layer)
        # AugResDAE: on=True, residual=True -> x + ae(x)
        out_ref[...] = (x0 + h).astype(out_ref.dtype)

    return kernel


def _choose_tile_hw(hw: int, max_tile_hw: int = 2048) -> int:
    hw_128 = ((hw + 127) // 128) * 128                     # lane-dense multiple of 128
    return min(hw_128, max_tile_hw)


def aug_res_dae_forward(x_nchw, weights_t, biases, *, max_tile_hw=2048):
    """x_nchw: (N, C, H, W) float32.
    weights_t[i]: (c_out, c_in) transposed 1x1-conv weights.
    biases[i]:    (c_out, 1).
    """
    N, C, H, W = x_nchw.shape
    HW = H * W
    num_layers = len(weights_t)

    # Free reshape: NCHW -> (N, C, HW). No transposes, no extra HBM traffic.
    x3 = x_nchw.reshape(N, C, HW)

    tile_hw = _choose_tile_hw(HW, max_tile_hw)
    hw_pad = pl.cdiv(HW, tile_hw) * tile_hw
    if hw_pad != HW:
        x3 = jnp.pad(x3, ((0, 0), (0, 0), (0, hw_pad - HW)))

    grid = (N, hw_pad // tile_hw)

    xio_spec = pl.BlockSpec((pl.Squeezed(), C, tile_hw), lambda n, j: (n, 0, j))
    in_specs = [xio_spec]
    # weights / biases: full-array blocks, resident across the whole grid
    for w in weights_t:
        in_specs.append(pl.BlockSpec(w.shape, lambda n, j: (0, 0)))
    for b in biases:
        in_specs.append(pl.BlockSpec(b.shape, lambda n, j: (0, 0)))

    # Advisory cost estimate: tiny-FLOP, HBM-bandwidth-bound op.
    flops = 2 * N * hw_pad * sum(int(w.shape[0]) * int(w.shape[1]) for w in weights_t)
    param_bytes = sum(int(w.size) * 4 for w in weights_t) + sum(int(b.size) * 4 for b in biases)
    bytes_accessed = 2 * N * hw_pad * C * 4 + param_bytes
    cost = pl.CostEstimate(flops=flops, transcendentals=0,
                           bytes_accessed=bytes_accessed)

    out3 = pl.pallas_call(
        _make_dae_kernel(num_layers),
        out_shape=jax.ShapeDtypeStruct((N, C, hw_pad), x3.dtype),
        grid=grid,
        in_specs=in_specs,
        out_specs=xio_spec,
        compiler_params=pltpu.CompilerParams(
            dimension_semantics=("parallel", "parallel")
        ),
        cost_estimate=cost,
    )(x3, *weights_t, *biases)

    if hw_pad != HW:
        out3 = out3[:, :, :HW]
    return out3.reshape(N, C, H, W)


# ----------------------------------------------------------------------------
# Deterministic parameter construction (PyTorch Conv2d-default-style init),
# weights stored pre-transposed as (c_out, c_in), biases as (c_out, 1).
# ----------------------------------------------------------------------------
def build_params(key, in_channels: int, depth: int):
    # encoder widths: C, C/2, ..., bottleneck ; decoder mirrors back to C
    enc = [in_channels] + [max(in_channels // (2 ** i), 2) for i in range(1, depth + 1)]
    widths = enc + enc[-2::-1]            # e.g. 16,8,4,2,4,8,16
    weights_t, biases = [], []
    for c_in, c_out in zip(widths[:-1], widths[1:]):
        key, kw, kb = jax.random.split(key, 3)
        bound = 1.0 / (c_in ** 0.5)       # matches nn.Conv2d default (kaiming a=sqrt(5))
        w_t = jax.random.uniform(kw, (c_out, c_in), jnp.float32, -bound, bound)
        b = jax.random.uniform(kb, (c_out, 1), jnp.float32, -bound, bound)
        weights_t.append(w_t)
        biases.append(b)
    return weights_t, biases


# ----------------------------------------------------------------------------
# Pure-JAX reference (same math, NCHW throughout) for correctness check.
# ----------------------------------------------------------------------------
def reference_forward(x_nchw, weights_t, biases):
    N, C, H, W = x_nchw.shape
    h = x_nchw.reshape(N, C, H * W).astype(jnp.float32)
    x0 = h
    L = len(weights_t)
    for i, (w_t, b) in enumerate(zip(weights_t, biases)):
        h = jnp.einsum("oc,ncs->nos", w_t, h) + b[None, :, :]
        if i < L - 1:
            h = jnp.maximum(h, 0.0)
    return (x0 + h).astype(x_nchw.dtype).reshape(N, C, H, W)


if __name__ == "__main__":
    key = jax.random.PRNGKey(0)
    k_x, k_p = jax.random.split(key)

    # AugResDAE(in_channels=16, in_dim=16, depth=3, block_size=1, residual=True)
    N, C, H, W = 2, 16, 16, 16
    depth = 3

    x = jax.random.normal(k_x, (N, C, H, W), jnp.float32)
    weights_t, biases = build_params(k_p, C, depth)

    out = aug_res_dae_forward(x, weights_t, biases)
    out = jax.block_until_ready(out)

    ref = reference_forward(x, weights_t, biases)
    assert out.shape == x.shape and out.dtype == x.dtype
    assert jnp.allclose(out, ref, atol=1e-4, rtol=1e-4), "mismatch vs reference"

    print("KERNEL_OK")
</pallas_src>

<mosaic_0001>
module attributes {stable_mosaic.version = 11 : i64} {
  func.func @kernel(%arg0: i32, %arg1: i32, %arg2: memref<1x16x256xf32, #tpu.memory_space<vmem>>, %arg3: memref<8x16xf32, #tpu.memory_space<vmem>>, %arg4: memref<4x8xf32, #tpu.memory_space<vmem>>, %arg5: memref<2x4xf32, #tpu.memory_space<vmem>>, %arg6: memref<4x2xf32, #tpu.memory_space<vmem>>, %arg7: memref<8x4xf32, #tpu.memory_space<vmem>>, %arg8: memref<16x8xf32, #tpu.memory_space<vmem>>, %arg9: memref<8x1xf32, #tpu.memory_space<vmem>>, %arg10: memref<4x1xf32, #tpu.memory_space<vmem>>, %arg11: memref<2x1xf32, #tpu.memory_space<vmem>>, %arg12: memref<4x1xf32, #tpu.memory_space<vmem>>, %arg13: memref<8x1xf32, #tpu.memory_space<vmem>>, %arg14: memref<16x1xf32, #tpu.memory_space<vmem>>, %arg15: memref<1x16x256xf32, #tpu.memory_space<vmem>>) attributes {dimension_semantics = [#tpu.dimension_semantics<parallel>, #tpu.dimension_semantics<parallel>], iteration_bounds = array<i64: 2, 1>, scalar_prefetch = 0 : i64, scratch_operands = 0 : i64, tpu.core_type = #tpu.core_type<tc>, window_params = [{transform_indices = @transform_0, window_bounds = array<i64: 1, 16, 256>}, {pipeline_mode = #tpu.pipeline_mode<synchronous>, transform_indices = @transform_1, window_bounds = array<i64: 8, 16>}, {pipeline_mode = #tpu.pipeline_mode<synchronous>, transform_indices = @transform_2, window_bounds = array<i64: 4, 8>}, {pipeline_mode = #tpu.pipeline_mode<synchronous>, transform_indices = @transform_3, window_bounds = array<i64: 2, 4>}, {pipeline_mode = #tpu.pipeline_mode<synchronous>, transform_indices = @transform_4, window_bounds = array<i64: 4, 2>}, {pipeline_mode = #tpu.pipeline_mode<synchronous>, transform_indices = @transform_5, window_bounds = array<i64: 8, 4>}, {pipeline_mode = #tpu.pipeline_mode<synchronous>, transform_indices = @transform_6, window_bounds = array<i64: 16, 8>}, {pipeline_mode = #tpu.pipeline_mode<synchronous>, transform_indices = @transform_7, window_bounds = array<i64: 8, 1>}, {pipeline_mode = #tpu.pipeline_mode<synchronous>, transform_indices = @transform_8, window_bounds = array<i64: 4, 1>}, {pipeline_mode = #tpu.pipeline_mode<synchronous>, transform_indices = @transform_9, window_bounds = array<i64: 2, 1>}, {pipeline_mode = #tpu.pipeline_mode<synchronous>, transform_indices = @transform_10, window_bounds = array<i64: 4, 1>}, {pipeline_mode = #tpu.pipeline_mode<synchronous>, transform_indices = @transform_11, window_bounds = array<i64: 8, 1>}, {pipeline_mode = #tpu.pipeline_mode<synchronous>, transform_indices = @transform_12, window_bounds = array<i64: 16, 1>}, {transform_indices = @transform_13, window_bounds = array<i64: 1, 16, 256>}]} {
    %c0 = arith.constant 0 : index
    %c0_0 = arith.constant 0 : index
    %c0_1 = arith.constant 0 : index
    %0 = vector.load %arg2[%c0, %c0_0, %c0_1] : memref<1x16x256xf32, #tpu.memory_space<vmem>>, vector<1x16x256xf32>
    %1 = vector.shape_cast %0 : vector<1x16x256xf32> to vector<16x256xf32>
    %c0_2 = arith.constant 0 : index
    %c0_3 = arith.constant 0 : index
    %2 = vector.load %arg3[%c0_2, %c0_3] : memref<8x16xf32, #tpu.memory_space<vmem>>, vector<8x16xf32>
    %cst = arith.constant dense<0.000000e+00> : vector<8x256xf32>
    %3 = tpu.matmul %2, %1, %cst {dimension_numbers = #tpu.dot_dimension_numbers<[1], [0], [0], [1], [0, 0, 1, 1], [], []>} : vector<8x16xf32>, vector<16x256xf32>, vector<8x256xf32> -> vector<8x256xf32>
    %c0_4 = arith.constant 0 : index
    %c0_5 = arith.constant 0 : index
    %4 = vector.load %arg9[%c0_4, %c0_5] : memref<8x1xf32, #tpu.memory_space<vmem>>, vector<8x1xf32>
    %5 = vector.broadcast %4 : vector<8x1xf32> to vector<8x256xf32>
    %6 = arith.addf %3, %5 : vector<8x256xf32>
    %cst_6 = arith.constant 0.000000e+00 : f32
    %7 = vector.broadcast %cst_6 : f32 to vector<8x256xf32>
    %8 = arith.maximumf %6, %7 : vector<8x256xf32>
    %c0_7 = arith.constant 0 : index
    %c0_8 = arith.constant 0 : index
    %9 = vector.load %arg4[%c0_7, %c0_8] : memref<4x8xf32, #tpu.memory_space<vmem>>, vector<4x8xf32>
    %cst_9 = arith.constant dense<0.000000e+00> : vector<4x256xf32>
    %10 = tpu.matmul %9, %8, %cst_9 {dimension_numbers = #tpu.dot_dimension_numbers<[1], [0], [0], [1], [0, 0, 1, 1], [], []>} : vector<4x8xf32>, vector<8x256xf32>, vector<4x256xf32> -> vector<4x256xf32>
    %c0_10 = arith.constant 0 : index
    %c0_11 = arith.constant 0 : index
    %11 = vector.load %arg10[%c0_10, %c0_11] : memref<4x1xf32, #tpu.memory_space<vmem>>, vector<4x1xf32>
    %12 = vector.broadcast %11 : vector<4x1xf32> to vector<4x256xf32>
    %13 = arith.addf %10, %12 : vector<4x256xf32>
    %cst_12 = arith.constant 0.000000e+00 : f32
    %14 = vector.broadcast %cst_12 : f32 to vector<4x256xf32>
    %15 = arith.maximumf %13, %14 : vector<4x256xf32>
    %c0_13 = arith.constant 0 : index
    %c0_14 = arith.constant 0 : index
    %16 = vector.load %arg5[%c0_13, %c0_14] : memref<2x4xf32, #tpu.memory_space<vmem>>, vector<2x4xf32>
    %cst_15 = arith.constant dense<0.000000e+00> : vector<2x256xf32>
    %17 = tpu.matmul %16, %15, %cst_15 {dimension_numbers = #tpu.dot_dimension_numbers<[1], [0], [0], [1], [0, 0, 1, 1], [], []>} : vector<2x4xf32>, vector<4x256xf32>, vector<2x256xf32> -> vector<2x256xf32>
    %c0_16 = arith.constant 0 : index
    %c0_17 = arith.constant 0 : index
    %18 = vector.load %arg11[%c0_16, %c0_17] : memref<2x1xf32, #tpu.memory_space<vmem>>, vector<2x1xf32>
    %19 = vector.broadcast %18 : vector<2x1xf32> to vector<2x256xf32>
    %20 = arith.addf %17, %19 : vector<2x256xf32>
    %cst_18 = arith.constant 0.000000e+00 : f32
    %21 = vector.broadcast %cst_18 : f32 to vector<2x256xf32>
    %22 = arith.maximumf %20, %21 : vector<2x256xf32>
    %c0_19 = arith.constant 0 : index
    %c0_20 = arith.constant 0 : index
    %23 = vector.load %arg6[%c0_19, %c0_20] : memref<4x2xf32, #tpu.memory_space<vmem>>, vector<4x2xf32>
    %cst_21 = arith.constant dense<0.000000e+00> : vector<4x256xf32>
    %24 = tpu.matmul %23, %22, %cst_21 {dimension_numbers = #tpu.dot_dimension_numbers<[1], [0], [0], [1], [0, 0, 1, 1], [], []>} : vector<4x2xf32>, vector<2x256xf32>, vector<4x256xf32> -> vector<4x256xf32>
    %c0_22 = arith.constant 0 : index
    %c0_23 = arith.constant 0 : index
    %25 = vector.load %arg12[%c0_22, %c0_23] : memref<4x1xf32, #tpu.memory_space<vmem>>, vector<4x1xf32>
    %26 = vector.broadcast %25 : vector<4x1xf32> to vector<4x256xf32>
    %27 = arith.addf %24, %26 : vector<4x256xf32>
    %cst_24 = arith.constant 0.000000e+00 : f32
    %28 = vector.broadcast %cst_24 : f32 to vector<4x256xf32>
    %29 = arith.maximumf %27, %28 : vector<4x256xf32>
    %c0_25 = arith.constant 0 : index
    %c0_26 = arith.constant 0 : index
    %30 = vector.load %arg7[%c0_25, %c0_26] : memref<8x4xf32, #tpu.memory_space<vmem>>, vector<8x4xf32>
    %cst_27 = arith.constant dense<0.000000e+00> : vector<8x256xf32>
    %31 = tpu.matmul %30, %29, %cst_27 {dimension_numbers = #tpu.dot_dimension_numbers<[1], [0], [0], [1], [0, 0, 1, 1], [], []>} : vector<8x4xf32>, vector<4x256xf32>, vector<8x256xf32> -> vector<8x256xf32>
    %c0_28 = arith.constant 0 : index
    %c0_29 = arith.constant 0 : index
    %32 = vector.load %arg13[%c0_28, %c0_29] : memref<8x1xf32, #tpu.memory_space<vmem>>, vector<8x1xf32>
    %33 = vector.broadcast %32 : vector<8x1xf32> to vector<8x256xf32>
    %34 = arith.addf %31, %33 : vector<8x256xf32>
    %cst_30 = arith.constant 0.000000e+00 : f32
    %35 = vector.broadcast %cst_30 : f32 to vector<8x256xf32>
    %36 = arith.maximumf %34, %35 : vector<8x256xf32>
    %c0_31 = arith.constant 0 : index
    %c0_32 = arith.constant 0 : index
    %37 = vector.load %arg8[%c0_31, %c0_32] : memref<16x8xf32, #tpu.memory_space<vmem>>, vector<16x8xf32>
    %cst_33 = arith.constant dense<0.000000e+00> : vector<16x256xf32>
    %38 = tpu.matmul %37, %36, %cst_33 {dimension_numbers = #tpu.dot_dimension_numbers<[1], [0], [0], [1], [0, 0, 1, 1], [], []>} : vector<16x8xf32>, vector<8x256xf32>, vector<16x256xf32> -> vector<16x256xf32>
    %c0_34 = arith.constant 0 : index
    %c0_35 = arith.constant 0 : index
    %39 = vector.load %arg14[%c0_34, %c0_35] : memref<16x1xf32, #tpu.memory_space<vmem>>, vector<16x1xf32>
    %40 = vector.broadcast %39 : vector<16x1xf32> to vector<16x256xf32>
    %41 = arith.addf %38, %40 : vector<16x256xf32>
    %42 = arith.addf %1, %41 : vector<16x256xf32>
    %c0_36 = arith.constant 0 : index
    %c0_37 = arith.constant 0 : index
    %c0_38 = arith.constant 0 : index
    %43 = vector.load %arg15[%c0_36, %c0_37, %c0_38] : memref<1x16x256xf32, #tpu.memory_space<vmem>>, vector<1x16x256xf32>
    %44 = vector.shape_cast %43 : vector<1x16x256xf32> to vector<16x256xf32>
    %45 = vector.shape_cast %42 : vector<16x256xf32> to vector<1x16x256xf32>
    tpu.vector_store %arg15[%c0_36, %c0_37, %c0_38], %45 {strides = array<i32>} : memref<1x16x256xf32, #tpu.memory_space<vmem>>, vector<1x16x256xf32>,
    return
  }
  func.func @transform_0(%arg0: i32, %arg1: i32) -> (i32, i32, i32) {
    %c0_i32 = arith.constant 0 : i32
    %c0_i32_0 = arith.constant 0 : i32
    return %arg0, %c0_i32, %arg1 : i32, i32, i32
  }
  func.func @transform_1(%arg0: i32, %arg1: i32) -> (i32, i32) {
    %c0_i32 = arith.constant 0 : i32
    %c0_i32_0 = arith.constant 0 : i32
    %c0_i32_1 = arith.constant 0 : i32
    return %c0_i32, %c0_i32_0 : i32, i32
  }
  func.func @transform_2(%arg0: i32, %arg1: i32) -> (i32, i32) {
    %c0_i32 = arith.constant 0 : i32
    %c0_i32_0 = arith.constant 0 : i32
    %c0_i32_1 = arith.constant 0 : i32
    return %c0_i32, %c0_i32_0 : i32, i32
  }
  func.func @transform_3(%arg0: i32, %arg1: i32) -> (i32, i32) {
    %c0_i32 = arith.constant 0 : i32
    %c0_i32_0 = arith.constant 0 : i32
    %c0_i32_1 = arith.constant 0 : i32
    return %c0_i32, %c0_i32_0 : i32, i32
  }
  func.func @transform_4(%arg0: i32, %arg1: i32) -> (i32, i32) {
    %c0_i32 = arith.constant 0 : i32
    %c0_i32_0 = arith.constant 0 : i32
    %c0_i32_1 = arith.constant 0 : i32
    return %c0_i32, %c0_i32_0 : i32, i32
  }
  func.func @transform_5(%arg0: i32, %arg1: i32) -> (i32, i32) {
    %c0_i32 = arith.constant 0 : i32
    %c0_i32_0 = arith.constant 0 : i32
    %c0_i32_1 = arith.constant 0 : i32
    return %c0_i32, %c0_i32_0 : i32, i32
  }
  func.func @transform_6(%arg0: i32, %arg1: i32) -> (i32, i32) {
    %c0_i32 = arith.constant 0 : i32
    %c0_i32_0 = arith.constant 0 : i32
    %c0_i32_1 = arith.constant 0 : i32
    return %c0_i32, %c0_i32_0 : i32, i32
  }
  func.func @transform_7(%arg0: i32, %arg1: i32) -> (i32, i32) {
    %c0_i32 = arith.constant 0 : i32
    %c0_i32_0 = arith.constant 0 : i32
    %c0_i32_1 = arith.constant 0 : i32
    return %c0_i32, %c0_i32_0 : i32, i32
  }
  func.func @transform_8(%arg0: i32, %arg1: i32) -> (i32, i32) {
    %c0_i32 = arith.constant 0 : i32
    %c0_i32_0 = arith.constant 0 : i32
    %c0_i32_1 = arith.constant 0 : i32
    return %c0_i32, %c0_i32_0 : i32, i32
  }
  func.func @transform_9(%arg0: i32, %arg1: i32) -> (i32, i32) {
    %c0_i32 = arith.constant 0 : i32
    %c0_i32_0 = arith.constant 0 : i32
    %c0_i32_1 = arith.constant 0 : i32
    return %c0_i32, %c0_i32_0 : i32, i32
  }
  func.func @transform_10(%arg0: i32, %arg1: i32) -> (i32, i32) {
    %c0_i32 = arith.constant 0 : i32
    %c0_i32_0 = arith.constant 0 : i32
    %c0_i32_1 = arith.constant 0 : i32
    return %c0_i32, %c0_i32_0 : i32, i32
  }
  func.func @transform_11(%arg0: i32, %arg1: i32) -> (i32, i32) {
    %c0_i32 = arith.constant 0 : i32
    %c0_i32_0 = arith.constant 0 : i32
    %c0_i32_1 = arith.constant 0 : i32
    return %c0_i32, %c0_i32_0 : i32, i32
  }
  func.func @transform_12(%arg0: i32, %arg1: i32) -> (i32, i32) {
    %c0_i32 = arith.constant 0 : i32
    %c0_i32_0 = arith.constant 0 : i32
    %c0_i32_1 = arith.constant 0 : i32
    return %c0_i32, %c0_i32_0 : i32, i32
  }
  func.func @transform_13(%arg0: i32, %arg1: i32) -> (i32, i32, i32) {
    %c0_i32 = arith.constant 0 : i32
    %c0_i32_0 = arith.constant 0 : i32
    return %arg0, %c0_i32, %arg1 : i32, i32, i32
  }
}

</mosaic_0001>

<bundles_post_ra>
// kernel: tpu_custom_call.1
= control target key start
LH: loop header
LB: loop body
LE: loop exit
PB: predicated region body
PF: predicated region fallthrough
CT: control target
= control target key end

     0   :  { %s1543_s0 = inlined_call_operand.vmem [shape: f32[2,16,256], index: 0, kind: input, shape index: {}]   ;;  %s1544_s1 = inlined_call_operand.vmem [shape: f32[8,16], index: 1, kind: input, shape index: {}]   ;;  %s1545_s2 = inlined_call_operand.vmem [shape: f32[4,8], index: 2, kind: input, shape index: {}]   ;;  %s1546_s3 = inlined_call_operand.vmem [shape: f32[2,4], index: 3, kind: input, shape index: {}]   ;;  %s1547_s4 = inlined_call_operand.vmem [shape: f32[4,2], index: 4, kind: input, shape index: {}]   ;;  %s1548_s5 = inlined_call_operand.vmem [shape: f32[8,4], index: 5, kind: input, shape index: {}]   ;;  %s1549_s6 = inlined_call_operand.vmem [shape: f32[16,8], index: 6, kind: input, shape index: {}]   ;;  %s1550_s7 = inlined_call_operand.vmem [shape: f32[8,1], index: 7, kind: input, shape index: {}]   ;;  %s1551_s8 = inlined_call_operand.vmem [shape: f32[4,1], index: 8, kind: input, shape index: {}]   ;;  %s1552_s9 = inlined_call_operand.vmem [shape: f32[2,1], index: 9, kind: input, shape index: {}]   ;;  %s1553_s10 = inlined_call_operand.vmem [shape: f32[4,1], index: 10, kind: input, shape index: {}]   ;;  %s1554_s11 = inlined_call_operand.vmem [shape: f32[8,1], index: 11, kind: input, shape index: {}]   ;;  %s1555_s12 = inlined_call_operand.vmem [shape: f32[16,1], index: 12, kind: input, shape index: {}]   ;;  %s1556_s13 = inlined_call_operand.hbm [shape: f32[2,16,256], index: 13, kind: output, shape index: {}]  }
   0x1   :  { %1558 = sst [smem:[#allocation6_spill]] %s1543_s0 }
   0x2   :  { %1559 = sst [smem:[#allocation7_spill]] %s1544_s1 }
   0x3   :  { %1560 = sst [smem:[#allocation8_spill]] %s1545_s2 }
   0x4   :  { %18 = vsyncpa [#allocation3], 0 }
   0x5   :  { %20 = vsyncpa [#allocation3 + $0x1], 0  ;;  %s1355_s25 = smov 0   ;;  %s1357_s26 = smov 0  }
   0x6   :  { %s1359_s27 = smov 0   ;;  %s1361_s28 = smov 0  }
   0x7   :  { %s1363_s29 = smov 0   ;;  %s1365_s30 = smov 0  }
   0x8 LB: > { %s1113_s14 = sadd.s32 4294967295, %s1278_s30   ;;  %s1114_s15 = sadd.s32 4294967294, %s1278_s30   ;;  %s1278_s30 = sphi %s1365_s30, %s26_s30   ;;  %s1274_s29 = sphi %s1363_s29, %s1572_s29   ;;  %s1270_s28 = sphi %s1361_s28, %s1571_s28   ;;  %s1266_s27 = sphi %s1359_s27, %s1570_s27   ;;  %s1262_s26 = sphi %s1357_s26, %s1569_s26   ;;  %s1258_s25 = sphi %s1355_s25, %s1568_s25  }
   0x9   : > { %s38_s16 = sadd.s32 1, %s1274_s29  ;;  %s327_s17 = sadd.s32 1, %s1266_s27 }
   0xa   : > { %p40_p0 = scmp.ge.s32.totalorder %s38_s16, 2  ;;  %p337_p1 = scmp.ne.s32.totalorder %s1266_s27, %s1262_s26 }
   0xb   : > { %p338_p2 = scmp.eq.s32.totalorder %s1113_s14, 1  ;;  %p343_p3 = scmp.ne.s32.totalorder %s1262_s26, %s1258_s25 }
   0xc   : > { %s1574_s16 = smov (%p40_p0, %s38_s16), 0  ;;  %p344_p5 = scmp.eq.s32.totalorder %s1114_s15, 1 }
   0xd   : > { %1561 = sst [smem:[#allocation5_spill]] %s1574_s16  ;;  %p1395_p4 = por %p338_p2, %p337_p1 }
   0xe   : > { %s322_s19 = ssub.s32 %s1274_s29, %s1574_s16  ;;  %p1117_p6 = scmp.ge.s32.totalorder %s1278_s30, 1 }
   0xf   : > { %p325_p7 = scmp.eq.s32.totalorder %s322_s19, 0  ;;  %p1402_p8 = por %p344_p5, %p343_p3 }
  0x10   : > { %p411_p9 = scmp.lt.s32.totalorder %s1278_s30, 3 }
  0x11   : > { %s1408_s21 = scalar_select %p325_p7, %s1266_s27, %s327_s17  }
  0x12   : > { %p412_p10 = pnand %p1117_p6, %p411_p9 }
  0x13   : > { %p460_p11 = scmp.lt.s32.totalorder (!%p412_p10), %s1270_s28, 1  ;;  %s1564_s0 = sld [smem:[#allocation6_spill]] (!%p412_p10) }
  0x14   : > { %415 = sbr.rel (%p412_p10) target bundleno = 1256 (0x4e8), region = 72  ;;  %s1565_s1 = sld [smem:[#allocation7_spill]] (!%p412_p10) }
  0x15   : > { %s1566_s2 = sld [smem:[#allocation8_spill]] (!%p412_p10)  ;;  %s456_s23 = sand.u32 (!%p412_p10), 1, %s1262_s26  }
  0x16   : > { %s1118_s14 = sshll.u32 (!%p412_p10), %s456_s23, 5  ;;  %s1140_s15 = sshll.u32 (!%p412_p10), %s1270_s28, 9 }
  0x19   : > { %v475_v0 = vld [vmem:[%s1550_s7] sm:$0xff]  ;;  %v1280_v1 = vmov 0.0   ;;  %v1281_v2 = vmov 0   ;;  %s461_s24 = scalar_select %p460_p11, %s1270_s28, 1  ;;  %vm481_vm0 = vcmask 130048   ;;  %v916_v10 = vld [vmem:[%s1555_s12 + $0x8] sm:$0xff] }
  0x1a   : > { %549 = vmatprep.mubr.f32.mxu0 %v1280_v1  ;;  %1200 = vset.pattern.permute.xlu0 %v1281_v2  ;;  %v559_v3 = vld [vmem:[%s1551_s8] sm:$0xf]  ;;  %vm565_vm1 = vcmask 64512   ;;  %vm653_vm2 = vcmask 1043456   ;;  %vm649_vm3 = vcmask 31744   ;;  %vm744_vm4 = vcmask 1041408  }
  0x1b   : > { %478 = vperm.xlu0 %1200, %v475_v0   ;;  %633 = vmatprep.mubr.f32.mxu1 %v1280_v1  ;;  %s1139_s17 = sshll.u32 %s461_s24, 5  ;;  %v825_v8 = vld [vmem:[%s1554_s11] sm:$0xff]  ;;  %vm740_vm5 = vcmask 15360   ;;  %v914_v54 = vld [vmem:[%s1549_s6 + $0x8] sm:$0xff]  ;;  %s458_s24 = scalar_lea.vmem [#allocation2], %s1118_s14 }
  0x1c   : > { %1201 = vset.pattern.permute.xlu1 %v1281_v2  ;;  %s467_s22 = scalar_lea.vmem %s1564_s0, %s1139_s17  ;;  %v474_v9 = vld [vmem:[%s1565_s1] sm:$0xff]  ;;  %s1034_s16 = sshll.u32 %s458_s24, 4  ;;  %s1490_s16 = int_to_ptr.vmem [resolvable:$true] %s1034_s16 }
  0x1d   : > { %v1423_v4 = vld [vmem:[%s467_s22 + $0x18] sm:$0xff]  ;;  %v1425_v5 = vld [vmem:[%s467_s22 + $0x10] sm:$0xff]  ;;  %v1427_v6 = vld [vmem:[%s467_s22 + $0x8] sm:$0xff]  ;;  %s1498_s28 = scalar_lea.sflag [#allocation3], %s456_s23  ;;  %s1202_s14 = scalar_lea.vmem %s1490_s16, 512 }
  0x1e   : > { %513 = vmatprep.subr.mxu0 %v1423_v4  ;;  %v1430_v7 = vld [vmem:[%s467_s22] sm:$0xff]  ;;  %s1495_s22 = scalar_lea.hbm %s1556_s13, %s1140_s15  ;;  %p1203_p12 = scmp.ne.s32.totalorder %s1490_s16, %s1202_s14 }
  0x1f   : > { %562 = vperm.xlu0 %1200, %v559_v3   ;;  %514 = vmatpush1.msra.mxu0 %v1425_v5  ;;  %v558_v18 = vld [vmem:[%s1566_s2] sm:$0xf]  ;;  %s1282_s0 = smov [#allocation2]  }
  0x20   : > { %515 = vmatprep.subr.mxu0 %v1427_v6  ;;  %v643_v19 = vld [vmem:[%s1552_s9] sm:$0x3]  ;;  %p1204_p13 = pnand %p1203_p12, %p1395_p4  ;;  %s1206_s1 = sshll.u32 %s1282_s0, 4  ;;  %s1207_s1 = int_to_ptr.vmem [resolvable:$false] %s1206_s1 }
  0x21   : > { %516 = vmatpush1.msra.mxu0 %v1430_v7  ;;  %646 = vperm.xlu1 %1201, %v643_v19   ;;  %v734_v20 = vld [vmem:[%s1553_s10] sm:$0xf]  ;;  %s1208_s17 = scalar_lea.vmem %s1207_s1, 1024  ;;  %p1209_p1 = scmp.lt.s32.totalorder %s1490_s16, %s1207_s1 }
  0x22   : > { %1121 = vmatmul.mubr.msk.f32.vlgmr.msra.gmra.mxu0 %vm481_vm0, %v474_v9  ;;  %v915_v21 = vld [vmem:[%s1555_s12] sm:$0xff]  ;;  %p1205_p0 = pneg %p1204_p13  ;;  %p1210_p2 = scmp.lt.s32.totalorder %s1208_s17, %s1202_s14 }
  0x23   : > { %828 = vperm.xlu0 %1200, %v825_v8   ;;  %997 = vmatprep.mubr.f32.mxu0 %v1280_v1  ;;  %v642_v29 = vld [vmem:[%s1546_s3] sm:$0x3] }
  0x24   : > { %v733_v37 = vld [vmem:[%s1547_s4] sm:$0xf]  ;;  %p1211_p3 = por %p1210_p2, %p1209_p1 }
  0x25   : > { %737 = vperm.xlu1 %1201, %v734_v20   ;;  %v824_v45 = vld [vmem:[%s1548_s5] sm:$0xff] }
  0x26   : > { %v913_v53 = vld [vmem:[%s1549_s6] sm:$0xff]  ;;  %p1212_p5 = pnand %p1211_p3, %p1205_p0 }
  0x27   : > { %924 = vperm.xlu0 %1200, %v916_v10  }
  0x29   : > { %919 = vperm.xlu1 %1201, %v915_v21  }
  0x96   : > { %v479_v12 = vpop.permute.xlu0 %478 }
  0x9a   : > { %v563_v23 = vpop.permute.xlu0 %562 }
  0x9c   : > { %v647_v31 = vpop.permute.xlu1 %646 }
  0x9e   : > { %v829_v47 = vpop.permute.xlu0 %828 }
  0xa0   : > { %v738_v39 = vpop.permute.xlu1 %737 }
  0xa2   : > { %v925_v61 = vpop.permute.xlu0 %924 }
  0xa4   : > { %v920_v55 = vpop.permute.xlu1 %919 }
  0xe2   : > { %v551_v11 = vpop.f32.mrf.mxu0 }
  0xe3   : > { %v552_v13 = vadd.f32 %v551_v11, %v479_v12 }
  0xe4   : > { %v553_v14 = vpop.f32.mrf.mxu0 }
  0xe5   : > { %v554_v15 = vadd.f32 %v553_v14, %v479_v12  ;;  %v556_v17 = vmax.f32 %v552_v13, 0.0 }
  0xe7   : > { %v557_v16 = vmax.f32 %v554_v15, 0.0 }
  0xe9   : > { %599 = vmatprep.subr.mxu1 %v557_v16 }
  0xea   : > { %600 = vmatpush1.msra.mxu1 %v556_v17 }
  0xeb   : > { %1122 = vmatmul.mubr.msk.f32.vlgmr.msra.gmra.mxu1 %vm565_vm1, %v558_v18 }
  0xec   : > { %724 = vmatprep.mubr.f32.mxu1 %v1280_v1 }
 0x1ab   : > { %v635_v22 = vpop.f32.mrf.mxu1 }
 0x1ac   : > { %v636_v24 = vadd.f32 %v635_v22, %v563_v23 }
 0x1ad   : > { %v637_v25 = vpop.f32.mrf.mxu1 }
 0x1ae   : > { %v638_v26 = vadd.f32 %v637_v25, %v563_v23  ;;  %v640_v28 = vmax.f32 %v636_v24, 0.0 }
 0x1b0   : > { %v641_v27 = vmax.f32 %v638_v26, 0.0 }
 0x1b2   : > { %1123 = vmatprep.subr.msk.mxu1 %vm653_vm2, %v641_v27 }
 0x1b3   : > { %1124 = vmatpush1.msk.msra.mxu1 %vm653_vm2, %v640_v28 }
 0x1b4   : > { %1125 = vmatmul.mubr.msk.f32.vlgmr.msra.gmra.mxu1 %vm649_vm3, %v642_v29 }
 0x1b5   : > { %815 = vmatprep.mubr.f32.mxu1 %v1280_v1 }
 0x274   : > { %v726_v30 = vpop.f32.mrf.mxu1 }
 0x275   : > { %v727_v32 = vadd.f32 %v726_v30, %v647_v31 }
 0x276   : > { %v728_v33 = vpop.f32.mrf.mxu1 }
 0x277   : > { %v729_v34 = vadd.f32 %v728_v33, %v647_v31  ;;  %v731_v36 = vmax.f32 %v727_v32, 0.0 }
 0x279   : > { %v732_v35 = vmax.f32 %v729_v34, 0.0 }
 0x27b   : > { %1126 = vmatprep.subr.msk.mxu1 %vm744_vm4, %v732_v35 }
 0x27c   : > { %1127 = vmatpush1.msk.msra.mxu1 %vm744_vm4, %v731_v36 }
 0x27d   : > { %1128 = vmatmul.mubr.msk.f32.vlgmr.msra.gmra.mxu1 %vm740_vm5, %v733_v37 }
 0x27e   : > { %904 = vmatprep.mubr.f32.mxu1 %v1280_v1 }
 0x33d   : > { %v817_v38 = vpop.f32.mrf.mxu1 }
 0x33e   : > { %v818_v40 = vadd.f32 %v817_v38, %v738_v39 }
 0x33f   : > { %v819_v41 = vpop.f32.mrf.mxu1 }
 0x340   : > { %v820_v42 = vadd.f32 %v819_v41, %v738_v39  ;;  %v822_v44 = vmax.f32 %v818_v40, 0.0 }
 0x342   : > { %v823_v43 = vmax.f32 %v820_v42, 0.0 }
 0x344   : > { %1129 = vmatprep.subr.msk.mxu1 %vm653_vm2, %v823_v43 }
 0x345   : > { %1130 = vmatpush1.msk.msra.mxu1 %vm653_vm2, %v822_v44 }
 0x346   : > { %1131 = vmatmul.mubr.msk.f32.vlgmr.msra.gmra.mxu1 %vm649_vm3, %v824_v45 }
 0x406   : > { %v906_v46 = vpop.f32.mrf.mxu1 }
 0x407   : > { %v907_v48 = vadd.f32 %v906_v46, %v829_v47 }
 0x408   : > { %v908_v49 = vpop.f32.mrf.mxu1 }
 0x409   : > { %v909_v50 = vadd.f32 %v908_v49, %v829_v47  ;;  %v911_v52 = vmax.f32 %v907_v48, 0.0 }
 0x40b   : > { %v912_v51 = vmax.f32 %v909_v50, 0.0 }
 0x40d   : > { %963 = vmatprep.subr.mxu0 %v912_v51 }
 0x40e   : > { %964 = vmatpush1.msra.mxu0 %v911_v52 }
 0x40f   : > { %1132 = vmatmul.mubr.msk.f32.vlgmr.msra.gmra.mxu0 %vm565_vm1, %v913_v53 }
 0x410   : > { %1003 = vmatprep.mubr.f32.mxu0 %v1280_v1 }
 0x413   : > { %1133 = vmatmul.mubr.msk.f32.gmra.mxu0 %vm565_vm1, %v914_v54 }
 0x4cf   : > { %v999_v56 = vpop.f32.mrf.mxu0 }
 0x4d0   : > { %v1000_v57 = vadd.f32 %v999_v56, %v920_v55 }
 0x4d1   : > { %v1001_v58 = vpop.f32.mrf.mxu0 }
 0x4d2   : > { %v1010_v59 = vadd.f32 %v1000_v57, %v1430_v7  ;;  %v1002_v60 = vadd.f32 %v1001_v58, %v920_v55 }
 0x4d3   : > { %v1005_v62 = vpop.f32.mrf.mxu0 }
 0x4d4   : > { %1014 = vst [vmem:[%s458_s24] sm:$0xff] %v1010_v59  ;;  %v1011_v63 = vadd.f32 %v1002_v60, %v1427_v6  ;;  %v1006_v0 = vadd.f32 %v1005_v62, %v925_v61 }
 0x4d5   : > { %v1007_v1 = vpop.f32.mrf.mxu0 }
 0x4d6   : > { %1015 = vst [vmem:[%s458_s24 + $0x8] sm:$0xff] %v1011_v63  ;;  %v1012_v2 = vadd.f32 %v1006_v0, %v1425_v5  ;;  %v1008_v3 = vadd.f32 %v1007_v1, %v925_v61 }
 0x4d8   : > { %1016 = vst [vmem:[%s458_s24 + $0x10] sm:$0xff] %v1012_v2  ;;  %v1013_v6 = vadd.f32 %v1008_v3, %v1423_v4 }
 0x4da   : > { %1017 = vst [vmem:[%s458_s24 + $0x18] sm:$0xff] %v1013_v6 }
 0x4db   : > { %1215 = shalt.err (!%p1212_p5)
}
 0x4dc   : > { %s1216_s23 = scalar_lea.hbm %s1495_s22, 512  ;;  %s1220_s0 = scalar_lea.hbm %s1556_s13, 1024 }
 0x4dd   : > { %p1217_p6 = scmp.ne.s32.totalorder %s1495_s22, %s1216_s23  ;;  %p1221_p10 = scmp.lt.s32.totalorder %s1495_s22, %s1556_s13 }
 0x4de   : > { %p1222_p11 = scmp.lt.s32.totalorder %s1220_s0, %s1216_s23 }
 0x4df   : > { %p1218_p7 = pnand %p1217_p6, %p1395_p4 }
 0x4e0   : > { %p1223_p12 = por %p1222_p11, %p1221_p10 }
 0x4e1   : > { %p1219_p9 = pneg %p1218_p7 }
 0x4e3   : > { %p1224_p13 = pnand %p1223_p12, %p1219_p9 }
 0x4e5   : > { %1227 = shalt.err (!%p1224_p13)
}
 0x4e6   : > { %s1283_s1 = smov 256   ;;  %s1284_s14 = smov 16  }
 0x4e7   : > { %1141 = dma.vmem_to_hbm [thread:$0]  (%p1395_p4), %s1490_s16, 512, %s1495_s22, %s1498_s28, %s1283_s1, %s1283_s1, %s1284_s14  }
 0x4e8 PF: > { %p1147_p0 = scmp.ge.s32.totalorder %s1278_s30, 2  ;;  %s1049_s17 = sand.u32 1, %s1258_s25  }
 0x4e9   : > { %s1050_s2 = scalar_lea.sflag [#allocation3], %s1049_s17 }
 0x4ea   : > { %p1144_p1 = pnand %p1147_p0, %p1402_p8 }
 0x4ec   : > { %p1145_p2 = pneg %p1144_p1 }
 0x4ee   : > { %1253 = dma.done.wait (%p1145_p2), %s1050_s2, 512  }
 0x4ef   : > { %1255 = vsyncadd (%p1145_p2), %s1050_s2, 4294966784  ;;  %s26_s30 = sadd.s32 1, %s1278_s30   ;;  %s1567_s18 = sld [smem:[#allocation5_spill]] }
 0x4f0   : > { %p23_p3 = scmp.ge.s32.totalorder %s26_s30, 4   ;;  %s1568_s25 = smov %s1262_s26 }
 0x4f1   : > { %s1569_s26 = smov %s1266_s27  ;;  %s1570_s27 = smov %s1408_s21 }
 0x4f2   : > { %s1571_s28 = smov %s1274_s29  ;;  %25 = sbr.rel (!%p23_p3) target bundleno = 8 (0x8), region = 107 }
 0x4f5   : > { %s1572_s29 = smov %s1567_s18 }
 0x4f7   :  { %1055 = vsyncpa [#allocation3], 1 }
 0x4f8   :  { %1057 = vsyncpa [#allocation3 + $0x1], 1 }

</bundles_post_ra>
